<compile_context>
chip_gen: v5e
topology: v5e:2x2
jax: 0.10.0
libtpu: 0.0.40
codegen_flags: <defaults>
</compile_context>

<pallas_src>
import functools

import jax
import jax.numpy as jnp
from jax.experimental import pallas as pl
from jax.experimental.pallas import tpu as pltpu


_NEG = -1e30                       # class-dim pad value (drops out of softmax exactly)
_NCORES = 2                        # leading "parallel" axis: 2 TCs on v7x, harmless elsewhere
_LANE = 128
_SUBLANE = 8
_VMEM_INPUT_BUDGET = 24 * 1024 * 1024    # 3 inputs x 2 pipeline buffers must fit here
_VMEM_LIMIT = 48 * 1024 * 1024           # scoped VMEM limit (< v7x's 64 MiB physical)


def _distill_kernel(lmd_ref, y_ref, t_ref, msk_ref, out_ref, acc_ref, *,
                    T, inv_batch, n_rows, tb, tiles_per_core, mask_rows):
    p = pl.program_id(0)
    i = pl.program_id(1)

    @pl.when(i == 0)
    def _init():
        acc_ref[0] = jnp.float32(0.0)

    inv_T = jnp.float32(1.0 / T)
    msk = msk_ref[...].astype(jnp.float32)
    ys = y_ref[...].astype(jnp.float32) * msk * inv_T      # student logits / T
    ts = t_ref[...].astype(jnp.float32) * msk * inv_T      # teacher logits / T

    # student log-softmax along class dim
    ymax = jnp.max(ys, axis=1, keepdims=True)
    y_lse = jnp.log(jnp.sum(jnp.exp(ys - ymax), axis=1, keepdims=True)) + ymax
    log_ps = ys - y_lse

    # teacher softmax stats + algebraic KL (no pt / log_pt temporaries, no per-elem divide):
    #   kl_row = (1/tsum) * sum_c texp * (t_shift - log_ps) - log(tsum)
    tmax = jnp.max(ts, axis=1, keepdims=True)
    t_shift = ts - tmax
    texp = jnp.exp(t_shift)
    tsum = jnp.sum(texp, axis=1, keepdims=True)
    row_num = jnp.sum(texp * (t_shift - log_ps), axis=1, keepdims=True)
    row_kl = row_num * pl.reciprocal(tsum, approx=False) - jnp.log(tsum)   # [TB, 1]

    if mask_rows:
        # exclude batch-padding rows exactly
        block_row0 = (p * tiles_per_core + i) * tb
        row_ids = jax.lax.broadcasted_iota(jnp.int32, row_kl.shape, 0) + block_row0
        row_kl = jnp.where(row_ids < n_rows, row_kl, jnp.float32(0.0))

    acc_ref[0] += jnp.sum(row_kl)

    @pl.when(i == pl.num_programs(1) - 1)
    def _finalize():
        scaled = acc_ref[0] * jnp.float32(inv_batch) * lmd_ref[0] * jnp.float32(T * T)
        out_ref[...] = jnp.broadcast_to(scaled, (_SUBLANE, _LANE))


def distillation_loss_msk_ce(y, teacher_scores, msk, lmd, *, T=2.0, scale=1.0):
    """Pallas equivalent of Distillation_Loss_MSK_CE(T, scale).forward(...)."""
    del scale  # unused in the PyTorch forward
    B, C = y.shape

    # ---- pad class dim to a multiple of 128 (lane-dense blocks) ----
    # Padded logits get a huge negative value (zero softmax mass); msk pads with 1
    # so the pad value is not multiplied away.
    Cp = ((C + _LANE - 1) // _LANE) * _LANE
    pad_c = Cp - C
    if pad_c:
        y = jnp.pad(y, ((0, 0), (0, pad_c)), constant_values=_NEG)
        teacher_scores = jnp.pad(teacher_scores, ((0, 0), (0, pad_c)),
                                 constant_values=_NEG)
        msk = jnp.pad(msk, ((0, 0), (0, pad_c)), constant_values=1)

    # ---- batch tile: multiple of 8, double-buffered footprint within budget ----
    bytes_per_row = 3 * 2 * Cp * 4                 # 3 inputs x 2 buffers x f32
    tb = max(_SUBLANE,
             (_VMEM_INPUT_BUDGET // bytes_per_row) // _SUBLANE * _SUBLANE)
    b_round = ((B + _SUBLANE - 1) // _SUBLANE) * _SUBLANE
    TB = min(tb, b_round)
    tiles_per_core = -(-B // (_NCORES * TB))       # ceil div, >= 1
    Bp = _NCORES * tiles_per_core * TB
    pad_b = Bp - B
    if pad_b:
        y = jnp.pad(y, ((0, pad_b), (0, 0)))
        teacher_scores = jnp.pad(teacher_scores, ((0, pad_b), (0, 0)))
        msk = jnp.pad(msk, ((0, pad_b), (0, 0)))
    # TODO(synk): for vocab-scale C (>~64k) also tile the class dim with an
    # online-softmax accumulation to keep the per-step VMEM bounded.

    lmd_arr = jnp.asarray(lmd, dtype=jnp.float32).reshape((1,))
    kernel = functools.partial(
        _distill_kernel, T=float(T), inv_batch=1.0 / B, n_rows=B, tb=TB,
        tiles_per_core=tiles_per_core, mask_rows=bool(pad_b))

    def _in_map(p, i, lmd_sref):
        return (p * tiles_per_core + i, 0)

    out = pl.pallas_call(
        kernel,
        out_shape=jax.ShapeDtypeStruct((_NCORES * _SUBLANE, _LANE), jnp.float32),
        grid_spec=pltpu.PrefetchScalarGridSpec(
            num_scalar_prefetch=1,
            grid=(_NCORES, tiles_per_core),
            in_specs=[
                pl.BlockSpec((TB, Cp), _in_map),   # y
                pl.BlockSpec((TB, Cp), _in_map),   # teacher_scores
                pl.BlockSpec((TB, Cp), _in_map),   # msk
            ],
            out_specs=pl.BlockSpec((_SUBLANE, _LANE),
                                   lambda p, i, lmd_sref: (p, 0)),
            scratch_shapes=[pltpu.SMEM((1,), jnp.float32)],
        ),
        compiler_params=pltpu.CompilerParams(
            dimension_semantics=("parallel", "arbitrary"),
            vmem_limit_bytes=_VMEM_LIMIT,
        ),
    )(lmd_arr, y, teacher_scores, msk)

    # one per-core partial per output tile (row 0, lane 0 of each (8,128) block)
    return jnp.sum(out[0::_SUBLANE, 0])


def _reference(y, teacher_scores, msk, lmd, T):
    ys = y * msk / T
    ts = teacher_scores * msk / T
    log_ps = jax.nn.log_softmax(ys, axis=1)
    pt = jax.nn.softmax(ts, axis=1)
    log_pt = jax.nn.log_softmax(ts, axis=1)
    kl = jnp.sum(pt * (log_pt - log_ps)) / y.shape[0]
    return kl * lmd * T * T


if __name__ == "__main__":
    T = 2.0
    B, C = 4, 32

    key = jax.random.PRNGKey(0)
    k1, k2, k3 = jax.random.split(key, 3)
    y = jax.random.normal(k1, (B, C), dtype=jnp.float32)
    teacher = jax.random.normal(k2, (B, C), dtype=jnp.float32)
    msk = (jax.random.uniform(k3, (B, C)) > 0.3).astype(jnp.float32)
    lmd = 0.7

    loss = distillation_loss_msk_ce(y, teacher, msk, lmd, T=T, scale=1.0)
    loss = jax.block_until_ready(loss)

    ref = _reference(y, teacher, msk, lmd, T)
    assert jnp.allclose(loss, ref, rtol=1e-5, atol=1e-5), (loss, ref)

    print("KERNEL_OK")
</pallas_src>

<mosaic_0001>
module attributes {stable_mosaic.version = 11 : i64} {
  func.func @_distill_kernel(%arg0: i32, %arg1: i32, %arg2: memref<1xf32, #tpu.memory_space<smem>>, %arg3: memref<8x128xf32, #tpu.memory_space<vmem>>, %arg4: memref<8x128xf32, #tpu.memory_space<vmem>>, %arg5: memref<8x128xf32, #tpu.memory_space<vmem>>, %arg6: memref<8x128xf32, #tpu.memory_space<vmem>>, %arg7: memref<1xf32, #tpu.memory_space<smem>>) attributes {dimension_semantics = [#tpu.dimension_semantics<parallel>, #tpu.dimension_semantics<arbitrary>], iteration_bounds = array<i64: 2, 1>, scalar_prefetch = 1 : i64, scratch_operands = 1 : i64, tpu.core_type = #tpu.core_type<tc>, window_params = [{transform_indices = @transform_0, window_bounds = array<i64: 8, 128>}, {transform_indices = @transform_1, window_bounds = array<i64: 8, 128>}, {transform_indices = @transform_2, window_bounds = array<i64: 8, 128>}, {transform_indices = @transform_3, window_bounds = array<i64: 8, 128>}]} {
    %c0_i32 = arith.constant 0 : i32
    %0 = arith.cmpi eq, %arg1, %c0_i32 : i32
    %1 = arith.extui %0 : i1 to i32
    %c0_i32_0 = arith.constant 0 : i32
    %2 = arith.cmpi ne, %1, %c0_i32_0 : i32
    scf.if %2 {
      %cst_18 = arith.constant 0.000000e+00 : f32
      %c0_19 = arith.constant 0 : index
      %58 = memref.load %arg7[%c0_19] : memref<1xf32, #tpu.memory_space<smem>>
      memref.store %cst_18, %arg7[%c0_19] : memref<1xf32, #tpu.memory_space<smem>>
    } else {
    }
    %c0 = arith.constant 0 : index
    %c0_1 = arith.constant 0 : index
    %3 = vector.load %arg5[%c0, %c0_1] : memref<8x128xf32, #tpu.memory_space<vmem>>, vector<8x128xf32>
    %c0_2 = arith.constant 0 : index
    %c0_3 = arith.constant 0 : index
    %4 = vector.load %arg3[%c0_2, %c0_3] : memref<8x128xf32, #tpu.memory_space<vmem>>, vector<8x128xf32>
    %5 = arith.mulf %4, %3 : vector<8x128xf32>
    %cst = arith.constant 5.000000e-01 : f32
    %6 = vector.broadcast %cst : f32 to vector<8x128xf32>
    %7 = arith.mulf %5, %6 : vector<8x128xf32>
    %c0_4 = arith.constant 0 : index
    %c0_5 = arith.constant 0 : index
    %8 = vector.load %arg4[%c0_4, %c0_5] : memref<8x128xf32, #tpu.memory_space<vmem>>, vector<8x128xf32>
    %9 = arith.mulf %8, %3 : vector<8x128xf32>
    %cst_6 = arith.constant 5.000000e-01 : f32
    %10 = vector.broadcast %cst_6 : f32 to vector<8x128xf32>
    %11 = arith.mulf %9, %10 : vector<8x128xf32>
    %cst_7 = arith.constant dense<0xFF800000> : vector<8xf32>
    %12 = vector.multi_reduction <maximumf>, %7, %cst_7 [1] : vector<8x128xf32> to vector<8xf32>
    %13 = vector.shape_cast %12 : vector<8xf32> to vector<8x1xf32>
    %14 = vector.broadcast %13 : vector<8x1xf32> to vector<8x128xf32>
    %15 = arith.subf %7, %14 : vector<8x128xf32>
    %16 = math.exp %15 : vector<8x128xf32>
    %cst_8 = arith.constant dense<0.000000e+00> : vector<8xf32>
    %17 = vector.multi_reduction <add>, %16, %cst_8 [1] : vector<8x128xf32> to vector<8xf32>
    %18 = vector.shape_cast %17 : vector<8xf32> to vector<8x1xf32>
    %19 = math.log %18 : vector<8x1xf32>
    %20 = arith.addf %19, %13 : vector<8x1xf32>
    %21 = vector.broadcast %20 : vector<8x1xf32> to vector<8x128xf32>
    %22 = arith.subf %7, %21 : vector<8x128xf32>
    %cst_9 = arith.constant dense<0xFF800000> : vector<8xf32>
    %23 = vector.multi_reduction <maximumf>, %11, %cst_9 [1] : vector<8x128xf32> to vector<8xf32>
    %24 = vector.shape_cast %23 : vector<8xf32> to vector<8x1xf32>
    %25 = vector.broadcast %24 : vector<8x1xf32> to vector<8x128xf32>
    %26 = arith.subf %11, %25 : vector<8x128xf32>
    %27 = math.exp %26 : vector<8x128xf32>
    %cst_10 = arith.constant dense<0.000000e+00> : vector<8xf32>
    %28 = vector.multi_reduction <add>, %27, %cst_10 [1] : vector<8x128xf32> to vector<8xf32>
    %29 = vector.shape_cast %28 : vector<8xf32> to vector<8x1xf32>
    %30 = arith.subf %26, %22 : vector<8x128xf32>
    %31 = arith.mulf %27, %30 : vector<8x128xf32>
    %cst_11 = arith.constant dense<0.000000e+00> : vector<8xf32>
    %32 = vector.multi_reduction <add>, %31, %cst_11 [1] : vector<8x128xf32> to vector<8xf32>
    %33 = vector.shape_cast %32 : vector<8xf32> to vector<8x1xf32>
    %34 = tpu.reciprocal %29 : vector<8x1xf32> -> vector<8x1xf32>
    %35 = arith.mulf %33, %34 : vector<8x1xf32>
    %36 = math.log %29 : vector<8x1xf32>
    %37 = arith.subf %35, %36 : vector<8x1xf32>
    %c1_i32 = arith.constant 1 : i32
    %38 = arith.muli %arg0, %c1_i32 : i32
    %39 = arith.addi %38, %arg1 : i32
    %c8_i32 = arith.constant 8 : i32
    %40 = arith.muli %39, %c8_i32 : i32
    %41 = tpu.iota {dimensions = array<i32: 0>} : vector<8x1xi32>
    %42 = vector.broadcast %40 : i32 to vector<8x1xi32>
    %43 = arith.addi %41, %42 : vector<8x1xi32>
    %c4_i32 = arith.constant 4 : i32
    %44 = vector.broadcast %c4_i32 : i32 to vector<8x1xi32>
    %45 = arith.cmpi slt, %43, %44 : vector<8x1xi32>
    %cst_12 = arith.constant 0.000000e+00 : f32
    %46 = vector.broadcast %cst_12 : f32 to vector<8x1xf32>
    %47 = arith.select %45, %37, %46 : vector<8x1xi1>, vector<8x1xf32>
    %c0_13 = arith.constant 0 : index
    %48 = memref.load %arg7[%c0_13] : memref<1xf32, #tpu.memory_space<smem>>
    %49 = vector.shape_cast %47 : vector<8x1xf32> to vector<1x8x1xf32>
    %cst_14 = arith.constant dense<0.000000e+00> : vector<1xf32>
    %50 = vector.multi_reduction <add>, %49, %cst_14 [1, 2] : vector<1x8x1xf32> to vector<1xf32>
    %51 = vector.shape_cast %50 : vector<1xf32> to vector<1x1x1xf32>
    %52 = vector.extract %51[0, 0, 0] : f32 from vector<1x1x1xf32>
    %53 = arith.addf %48, %52 : f32
    %c0_15 = arith.constant 0 : index
    %54 = memref.load %arg7[%c0_15] : memref<1xf32, #tpu.memory_space<smem>>
    memref.store %53, %arg7[%c0_15] : memref<1xf32, #tpu.memory_space<smem>>
    %c0_i32_16 = arith.constant 0 : i32
    %55 = arith.cmpi eq, %arg1, %c0_i32_16 : i32
    %56 = arith.extui %55 : i1 to i32
    %c0_i32_17 = arith.constant 0 : i32
    %57 = arith.cmpi ne, %56, %c0_i32_17 : i32
    scf.if %57 {
      %c0_18 = arith.constant 0 : index
      %58 = memref.load %arg7[%c0_18] : memref<1xf32, #tpu.memory_space<smem>>
      %cst_19 = arith.constant 2.500000e-01 : f32
      %59 = arith.mulf %58, %cst_19 : f32
      %c0_20 = arith.constant 0 : index
      %60 = memref.load %arg2[%c0_20] : memref<1xf32, #tpu.memory_space<smem>>
      %61 = arith.mulf %59, %60 : f32
      %cst_21 = arith.constant 4.000000e+00 : f32
      %62 = arith.mulf %61, %cst_21 : f32
      %63 = vector.broadcast %62 : f32 to vector<8x128xf32>
      %c0_22 = arith.constant 0 : index
      %c0_23 = arith.constant 0 : index
      %64 = vector.load %arg6[%c0_22, %c0_23] : memref<8x128xf32, #tpu.memory_space<vmem>>, vector<8x128xf32>
      tpu.vector_store %arg6[%c0_22, %c0_23], %63 {strides = array<i32>} : memref<8x128xf32, #tpu.memory_space<vmem>>, vector<8x128xf32>,
    } else {
    }
    return
  }
  func.func @transform_0(%arg0: i32, %arg1: i32, %arg2: memref<1xf32, #tpu.memory_space<smem>>) -> (i32, i32) {
    %c1_i32 = arith.constant 1 : i32
    %0 = arith.muli %arg0, %c1_i32 : i32
    %1 = arith.addi %0, %arg1 : i32
    %c0_i32 = arith.constant 0 : i32
    %c0_i32_0 = arith.constant 0 : i32
    return %1, %c0_i32 : i32, i32
  }
  func.func @transform_1(%arg0: i32, %arg1: i32, %arg2: memref<1xf32, #tpu.memory_space<smem>>) -> (i32, i32) {
    %c1_i32 = arith.constant 1 : i32
    %0 = arith.muli %arg0, %c1_i32 : i32
    %1 = arith.addi %0, %arg1 : i32
    %c0_i32 = arith.constant 0 : i32
    %c0_i32_0 = arith.constant 0 : i32
    return %1, %c0_i32 : i32, i32
  }
  func.func @transform_2(%arg0: i32, %arg1: i32, %arg2: memref<1xf32, #tpu.memory_space<smem>>) -> (i32, i32) {
    %c1_i32 = arith.constant 1 : i32
    %0 = arith.muli %arg0, %c1_i32 : i32
    %1 = arith.addi %0, %arg1 : i32
    %c0_i32 = arith.constant 0 : i32
    %c0_i32_0 = arith.constant 0 : i32
    return %1, %c0_i32 : i32, i32
  }
  func.func @transform_3(%arg0: i32, %arg1: i32, %arg2: memref<1xf32, #tpu.memory_space<smem>>) -> (i32, i32) {
    %c0_i32 = arith.constant 0 : i32
    %c0_i32_0 = arith.constant 0 : i32
    return %arg0, %c0_i32 : i32, i32
  }
}

</mosaic_0001>

<bundles_post_ra>
// kernel: tpu_custom_call.1
= control target key start
LH: loop header
LB: loop body
LE: loop exit
PB: predicated region body
PF: predicated region fallthrough
CT: control target
= control target key end

     0   :  { %s987_s0 = inlined_call_operand.<no memory space> [shape: f32[1], index: 0, kind: input, shape index: {}]   ;;  %s988_s1 = inlined_call_operand.hbm [shape: f32[16,128], index: 1, kind: input, shape index: {}]   ;;  %s989_s2 = inlined_call_operand.hbm [shape: f32[16,128], index: 2, kind: input, shape index: {}]   ;;  %s990_s3 = inlined_call_operand.hbm [shape: f32[16,128], index: 3, kind: input, shape index: {}]   ;;  %s991_s4 = inlined_call_operand.hbm [shape: f32[16,128], index: 4, kind: output, shape index: {}]  }
   0x1   :  { %994 = sst [smem:[#allocation18_spill]] %s989_s2 }
   0x2   :  { %9 = sst [smem:[#allocation4]] %s987_s0 }
   0x3   :  { %10 = vsyncpa [#allocation6], 0 }
   0x4   :  { %12 = vsyncpa [#allocation6 + $0x1], 0 }
   0x5   :  { %13 = vsyncpa [#allocation9], 0 }
   0x6   :  { %15 = vsyncpa [#allocation9 + $0x1], 0 }
   0x7   :  { %16 = vsyncpa [#allocation7], 0 }
   0x8   :  { %18 = vsyncpa [#allocation7 + $0x1], 0  ;;  %s825_s17 = smov 0   ;;  %s827_s18 = smov 0  }
   0x9   :  { %s829_s19 = smov 0   ;;  %s831_s20 = smov 0  }
   0xa   :  { %s833_s21 = smov 0   ;;  %s835_s22 = smov 0  }
   0xb LB: > { %995 = sst [smem:[#allocation15_spill]] %s791_s21  ;;  %s856_s0 = sadd.s32 4294967295, %s795_s22   ;;  %s795_s22 = sphi %s835_s22, %s24_s22   ;;  %s791_s21 = sphi %s833_s21, %s1007_s21   ;;  %s787_s20 = sphi %s831_s20, %s1006_s20   ;;  %s783_s19 = sphi %s829_s19, %s1010_s19   ;;  %s779_s18 = sphi %s827_s18, %s1009_s18   ;;  %s775_s17 = sphi %s825_s17, %s1008_s17  }
   0xc   : > { %s516_s23 = sadd.s32 4294967294, %s795_s22   ;;  %s36_s24 = sadd.s32 1, %s791_s21 }
   0xd   : > { %s45_s25 = sadd.s32 1, %s783_s19  ;;  %p38_p0 = scmp.ge.s32.totalorder %s36_s24, 2 }
   0xe   : > { %p52_p1 = scmp.ne.s32.totalorder %s783_s19, %s779_s18  ;;  %p53_p2 = scmp.eq.s32.totalorder %s795_s22, 0 }
   0xf   : > { %p58_p3 = scmp.ne.s32.totalorder %s779_s18, %s775_s17  ;;  %s1012_s24 = smov (%p38_p0, %s36_s24), 0 }
  0x10   : > { %996 = sst [smem:[#allocation16_spill]] %s1012_s24  ;;  %p868_p4 = por %p53_p2, %p52_p1 }
  0x11   : > { %p59_p5 = scmp.eq.s32.totalorder %s856_s0, 0  ;;  %s42_s27 = ssub.s32 %s791_s21, %s1012_s24 }
  0x12   : > { %p138_p6 = scmp.eq.s32.totalorder %s856_s0, 1  ;;  %p43_p7 = scmp.eq.s32.totalorder %s42_s27, 0 }
  0x13   : > { %p876_p8 = por %p59_p5, %p58_p3  ;;  %p144_p10 = scmp.eq.s32.totalorder %s516_s23, 1 }
  0x14   : > { %p880_p9 = por %p138_p6, %p52_p1  ;;  %p518_p12 = scmp.ge.s32.totalorder %s795_s22, 2 }
  0x15   : > { %s885_s30 = scalar_select %p43_p7, %s783_s19, %s45_s25  }
  0x16   : > { %p887_p11 = por %p144_p10, %p58_p3  ;;  %p559_p13 = scmp.lt.s32.totalorder %s795_s22, 2 }
  0x17   : > { %1000 = sst [smem:[#allocation17_spill]] %s885_s30  ;;  %s164_s6 = sand.u32 1, %s783_s19  }
  0x18   : > { %s519_s7 = sshll.u32 %s164_s6, 3  ;;  %s520_s8 = sshll.u32 %s791_s21, 3 }
  0x19   : > { %p897_p0 = pnand %p559_p13, %p868_p4  ;;  %s184_s10 = sand.u32 1, %s795_s22  }
  0x1a   : > { %s1003_s2 = sld [smem:[#allocation18_spill]]  ;;  %s188_s15 = scalar_lea.vmem [#allocation8], %s519_s7 }
  0x1b   : > { %s197_s16 = sshll.u32 %s188_s15, 4  ;;  %s185_s23 = scalar_lea.sflag [#allocation9], %s184_s10  ;;  %s198_s16 = int_to_ptr.vmem [resolvable:$true] %s197_s16 }
  0x1c   : > { %p525_p1 = scmp.ge.s32.totalorder %s795_s22, 1  ;;  %p222_p2 = scmp.lt.s32.totalorder %s795_s22, 3 }
  0x1d   : > { %s173_s11 = scalar_lea.hbm %s988_s1, %s520_s8  ;;  %s165_s15 = scalar_lea.sflag [#allocation6], %s164_s6 }
  0x1e   : > { %p909_p3 = pnand %p525_p1, %p222_p2  ;;  %s175_s12 = sshll.u32 %s173_s11, 4  ;;  %s176_s12 = int_to_ptr.hbm [resolvable:$true] %s175_s12 }
  0x1f   : > { %s208_s21 = scalar_lea.vmem [#allocation10], %s519_s7  ;;  %s926_s26 = sand.u32 (!%p909_p3), 1, %s779_s18  }
  0x20   : > { %s193_s13 = scalar_lea.hbm %s1003_s2, %s520_s8  ;;  %s217_s30 = sshll.u32 %s208_s21, 4  ;;  %s218_s30 = int_to_ptr.vmem [resolvable:$true] %s217_s30 }
  0x21   : > { %s195_s14 = sshll.u32 %s193_s13, 4  ;;  %s168_s13 = scalar_lea.vmem [#allocation5], %s519_s7  ;;  %s196_s14 = int_to_ptr.hbm [resolvable:$true] %s195_s14 }
  0x22   : > { %551 = dma.hbm_to_vmem [thread:$0]  (!%p897_p0), %s196_s14, 128, %s198_s16, %s185_s23  }
  0x23   : > { %s177_s2 = sshll.u32 %s168_s13, 4  ;;  %s213_s16 = scalar_lea.hbm %s990_s3, %s520_s8  ;;  %s178_s2 = int_to_ptr.vmem [resolvable:$true] %s177_s2 }
  0x24   : > { %548 = dma.hbm_to_vmem [thread:$0]  (!%p897_p0), %s176_s12, 128, %s178_s2, %s165_s15  }
  0x25   : > { %s215_s24 = sshll.u32 %s213_s16, 4  ;;  %226 = sbr.rel (%p909_p3) target bundleno = 622 (0x26e), region = 32  ;;  %s216_s24 = int_to_ptr.hbm [resolvable:$true] %s215_s24 }
  0x26   : > { %554 = dma.hbm_to_vmem [thread:$0]  (!%p897_p0), %s216_s24, 128, %s218_s30, %s185_s23  }
  0x27   : > { %s929_s2 = sshll.u32 (!%p909_p3), %s926_s26, 3  ;;  %s229_s6 = scalar_lea.sflag (!%p909_p3), [#allocation6], %s926_s26 }
  0x28   : > { %s232_s8 = scalar_lea.vmem (!%p909_p3), [#allocation5], %s929_s2 }
  0x2a   : > { %762 = dma.done.wait (%p876_p8), %s229_s6, 128  }
  0x2b   : > { %764 = vsyncadd (%p876_p8), %s229_s6, 4294967168  ;;  %s238_s21 = sand.u32 1, %s856_s0   ;;  %s242_s30 = scalar_lea.vmem [#allocation8], %s929_s2 }
  0x2c   : > { %s239_s24 = scalar_lea.sflag [#allocation9], %s238_s21 }
  0x2d   : > { %766 = dma.done.wait (%p876_p8), %s239_s24, 256  }
  0x2e   : > { %768 = vsyncadd (%p876_p8), %s239_s24, 4294967040  ;;  %s252_s7 = scalar_lea.vmem [#allocation10], %s929_s2  ;;  %v296_v1 = vld [vmem:[%s232_s8] sm:$0xff]  ;;  %v299_v3 = vld [vmem:[%s242_s30] sm:$0xff]  ;;  %v344_v27 = vlaneseq  ;;  %s530_s0 = sshll.u32 %s787_s20, 3  ;;  %vm351_vm5 = vcmask 7168  }
  0x2f   : > { %v295_v0 = vld [vmem:[%s252_s7] sm:$0xff]  ;;  %v346_v32 = vstv %s530_s0  ;;  %s370_s28 = sld [smem:[#allocation4]]  ;;  %s386_s25 = scalar_lea.hbm %s991_s4, %s530_s0 }
  0x30   : > { %v297_v2 = vmul.f32 %v296_v1, %v295_v0  ;;  %v300_v5 = vmul.f32 %v299_v3, %v295_v0  ;;  %v345_v31 = vshrl.u32 %v344_v27, 7  ;;  %s285_s12 = scalar_lea.vmem [#allocation11], %s929_s2  ;;  %s390_s10 = sshll.u32 %s386_s25, 4  ;;  %s391_s10 = int_to_ptr.hbm [resolvable:$true] %s390_s10 }
  0x31   : > { %s388_s13 = sshll.u32 %s285_s12, 4  ;;  %s376_s16 = scalar_lea.sflag [#allocation7], %s926_s26  ;;  %s389_s13 = int_to_ptr.vmem [resolvable:$true] %s388_s13 }
  0x32   : > { %v298_v4 = vmul.f32 0.5, %v297_v2  ;;  %v301_v6 = vmul.f32 0.5, %v300_v5  ;;  %v347_v36 = vadd.s32 %v346_v32, %v345_v31  ;;  %s723_s6 = sshra.s32 %s391_s10, 4  ;;  %s729_s2 = scalar_lea.hbm %s991_s4, 16  ;;  %s724_s6 = int_to_ptr.hbm [resolvable:$true] %s723_s6 }
  0x33   : > { %s725_s20 = scalar_lea.hbm %s724_s6, 8  ;;  %p730_p7 = scmp.lt.s32.totalorder %s724_s6, %s991_s4 }
  0x34   : > { %302 = vmax.xlane.f32.xlu0 %v298_v4  ;;  %vm348_vm4 = vcmp.lt.s32.totalorder %v347_v36, 4  ;;  %p726_p4 = scmp.ne.s32.totalorder %s724_s6, %s725_s20  ;;  %p731_p8 = scmp.lt.s32.totalorder %s729_s2, %s725_s20 }
  0x36   : > { %p727_p5 = pnand %p726_p4, %p880_p9  ;;  %p732_p10 = por %p731_p8, %p730_p7 }
  0x38   : > { %p728_p6 = pneg %p727_p5 }
  0x3a   : > { %p733_p13 = pnand %p732_p10, %p728_p6 }
  0x3c   : > { %313 = vmax.xlane.f32.xlu0 %v301_v6 }
  0xa7   : > { %v303_v7 = vpop.xlane.xlu0 %302 }
  0xa8   : > { %v304_v8 = vsub.f32 %v298_v4, %v303_v7 }
  0xaa   : > { %v305_v9 = vmul.f32 1.442695, %v304_v8 }
  0xac   : > { %609 = vpow2.f32 %v305_v9 }
  0xaf   : > { %v314_v10 = vpop.xlane.xlu0 %313 }
  0xb0   : > { %v315_v11 = vsub.f32 %v301_v6, %v314_v10 }
  0xb2   : > { %v610_v12 = vpop.eup %609  ;;  %v316_v13 = vmul.f32 1.442695, %v315_v11 }
  0xb3   : > { %307 = vadd.xlane.f32.xlu1 %v610_v12 }
  0xb4   : > { %611 = vpow2.f32 %v316_v13 }
  0xba   : > { %v612_v14 = vpop.eup %611 }
  0xbb   : > { %318 = vadd.xlane.f32.xlu1 %v612_v14 }
 0x126   : > { %v308_v15 = vpop.xlane.xlu1 %307 }
 0x127   : > { %613 = vlog2.f32 %v308_v15 }
 0x12d   : > { %v614_v16 = vpop.eup %613 }
 0x12e   : > { %v310_v17 = vmul.f32 0.6931472, %v614_v16  ;;  %v319_v22 = vpop.xlane.xlu1 %318 }
 0x12f   : > { %615 = vrcp.f32 %v319_v22  ;;  %vm329_vm0 = vweird.f32 %v319_v22  ;;  %v335_v28 = vand.u32 2147483648, %v319_v22  ;;  %v333_v30 = vand.u32 2147483647, %v319_v22 }
 0x130   : > { %v311_v18 = vadd.f32 %v310_v17, %v303_v7  ;;  %617 = vlog2.f32 %v319_v22 }
 0x131   : > { %v336_v33 = vor.u32 1.1754944e-38, %v335_v28  ;;  %vm334_vm3 = vcmp.eq.f32.partialorder %v333_v30, 8.507059e+37 }
 0x132   : > { %v312_v19 = vsub.f32 %v298_v4, %v311_v18 }
 0x134   : > { %v320_v20 = vsub.f32 %v315_v11, %v312_v19 }
 0x135   : > { %v616_v23 = vpop.eup %615 }
 0x136   : > { %v321_v21 = vmul.f32 %v612_v14, %v320_v20  ;;  %v325_v24 = vmul.f32 %v616_v23, %v319_v22  ;;  %vm330_vm1 = vweird.f32 %v616_v23  ;;  %v618_v35 = vpop.eup %617 }
 0x137   : > { %vm331_vm2 = vmor %vm329_vm0, %vm330_vm1  ;;  %v340_v39 = vmul.f32 0.6931472, %v618_v35 }
 0x138   : > { %322 = vadd.xlane.f32.xlu2 %v321_v21  ;;  %v326_v25 = vsub.f32 1.0, %v325_v24 }
 0x13a   : > { %v327_v26 = vmul.f32 %v616_v23, %v326_v25 }
 0x13c   : > { %v328_v29 = vadd.f32 %v616_v23, %v327_v26 }
 0x13e   : > { %v332_v34 = vsel %vm331_vm2, %v616_v23, %v328_v29 }
 0x13f   : > { %v337_v37 = vsel %vm334_vm3, %v336_v33, %v332_v34 }
 0x1ab   : > { %v323_v38 = vpop.xlane.xlu2 %322 }
 0x1ac   : > { %v338_v40 = vmul.f32 %v337_v37, %v323_v38 }
 0x1ae   : > { %v341_v41 = vsub.f32 %v338_v40, %v340_v39 }
 0x1b0   : > { %v349_v42 = vsel %vm348_vm4, %v341_v41, 0.0 }
 0x1b1   : > { %v352_v43 = vsel %vm351_vm5, %v349_v42, 0.0 }
 0x1b2   : > { %353 = vadd.xlane.f32.xlu2 %v352_v43 }
 0x225   : > { %v354_v44 = vpop.xlane.xlu2 %353 }
 0x226   : > { %v355_v45 = vrot.slane %v354_v44, 4 }
 0x228   : > { %v356_v46 = vadd.f32 %v355_v45, %v354_v44 }
 0x22a   : > { %v357_v47 = vrot.slane %v356_v46, 2 }
 0x22c   : > { %v358_v48 = vadd.f32 %v357_v47, %v356_v46 }
 0x22e   : > { %v359_v49 = vrot.slane %v358_v48, 1 }
 0x230   : > { %v360_v50 = vadd.f32 %v359_v49, %v358_v48 }
 0x232   : > { %535 = vpush %v360_v50 }
 0x263   : > { %s536_s27 = spop %535 }
 0x264   : > { %s369_s11 = smul.f32 0.25, %s536_s27 }
 0x266   : > { %s371_s15 = smul.f32 %s370_s28, %s369_s11 }
 0x268   : > { %s372_s14 = smul.f32 4.0, %s371_s15 }
 0x26a   : > { %v373_v51 = vstv %s372_s14 }
 0x26b   : > { %374 = vst [vmem:[%s285_s12] sm:$0xff] %v373_v51 }
 0x26c   : > { %736 = shalt.err (!%p733_p13)
}
 0x26d   : > { %543 = dma.vmem_to_hbm [thread:$0]  (%p880_p9), %s389_s13, 128, %s391_s10, %s376_s16  }
 0x26e PF: > { %s402_s26 = sand.u32 1, %s775_s17   ;;  %p556_p0 = pnand %p518_p12, %p887_p11 }
 0x26f   : > { %s403_s7 = scalar_lea.sflag [#allocation7], %s402_s26 }
 0x270   : > { %p557_p1 = pneg %p556_p0 }
 0x272   : > { %770 = dma.done.wait (%p557_p1), %s403_s7, 128  }
 0x273   : > { %772 = vsyncadd (%p557_p1), %s403_s7, 4294967168  ;;  %s24_s22 = sadd.s32 1, %s795_s22   ;;  %s1005_s0 = sld [smem:[#allocation17_spill]] }
 0x274   : > { %p21_p2 = scmp.ge.s32.totalorder %s24_s22, 4   ;;  %s1006_s20 = sld [smem:[#allocation15_spill]] }
 0x275   : > { %s1007_s21 = sld [smem:[#allocation16_spill]]  ;;  %s1008_s17 = smov %s779_s18 }
 0x276   : > { %s1009_s18 = smov %s783_s19  ;;  %23 = sbr.rel (!%p21_p2) target bundleno = 11 (0xb), region = 111 }
 0x279   : > { %s1010_s19 = smov %s1005_s0 }
 0x27b   :  { %409 = vsyncpa [#allocation6], 1 }
 0x27c   :  { %411 = vsyncpa [#allocation6 + $0x1], 1 }
 0x27d   :  { %412 = vsyncpa [#allocation9], 1 }
 0x27e   :  { %414 = vsyncpa [#allocation9 + $0x1], 1 }
 0x27f   :  { %415 = vsyncpa [#allocation7], 1 }
 0x280   :  { %417 = vsyncpa [#allocation7 + $0x1], 1 }

</bundles_post_ra>
